<compile_context>
chip_gen: v7x
topology: tpu7x:2x2x1
jax: 0.10.0
libtpu: 0.0.40
codegen_flags: <defaults>
</compile_context>

<pallas_src>
import functools

import jax
import jax.numpy as jnp
from jax.experimental import pallas as pl
from jax.experimental.pallas import tpu as pltpu


def _conv_kernel(x_ref, w_ref, *rest, b_blk, c_in, h, w, pad, w_pad,
                 tap_offsets, m_r, has_scale, has_bias, use_act):
    """One grid step = B_blk batch elements.

    x_ref:     (B_blk, C_in, H*W)        raw (unpadded) images, input dtype
    w_ref:     (KH*KW, C_out, C_in_p)    taps, compute dtype, C_in zero-padded
    scale_ref: (C_out, 1) f32            optional (eval-mode norm scale)
    bias_ref:  (C_out, 1) f32            optional (norm shift / conv bias)
    o_ref:     (B_blk, C_out, M_r)       lane-dense flattened output, M_r%128==0
    xp_ref:    (C_in_p, L_store)         VMEM staging scratch (compute dtype)
    """
    pos = list(rest)
    scale_ref = pos.pop(0) if has_scale else None
    bias_ref = pos.pop(0) if has_bias else None
    o_ref, xp_ref = pos

    # Zero the staging scratch once: spatial border, padded channel rows and the
    # lane tail beyond the image stay zero for every image in the block.
    xp_ref[...] = jnp.zeros(xp_ref.shape, xp_ref.dtype)

    w_all = w_ref[...]                       # (KH*KW, C_out, C_in_p), resident
    c_out = w_all.shape[1]

    for bi in range(b_blk):
        # ---- stage (and cast) the image into the zero-padded scratch --------
        if pad == 0:
            xp_ref[0:c_in, 0:h * w] = x_ref[bi].astype(xp_ref.dtype)
        else:
            # TODO(synk): switch to a fori_loop / H_out tiling for large H.
            for r in range(h):
                dst = (pad + r) * w_pad + pad
                xp_ref[0:c_in, dst:dst + w] = (
                    x_ref[bi, :, r * w:(r + 1) * w].astype(xp_ref.dtype))

        # ---- conv: per-tap matmuls accumulated in f32 ------------------------
        acc = jnp.zeros((c_out, m_r), jnp.float32)
        for t, off in enumerate(tap_offsets):
            acc = acc + jnp.dot(w_all[t], xp_ref[:, off:off + m_r],
                                preferred_element_type=jnp.float32)

        # ---- epilogue on the f32 accumulator (free VPU work) ----------------
        if has_scale:
            acc = acc * scale_ref[...]       # (C_out, 1) broadcast over lanes
        if has_bias:
            acc = acc + bias_ref[...]
        if use_act:
            acc = jnp.maximum(acc, 0.0)

        o_ref[bi] = acc.astype(o_ref.dtype)  # dense, 128-multiple lane store


def basic_conv2d(x, weight, *, padding=0, stride=1, scale=None, bias=None,
                 act=False, compute_dtype=None, batch_block=None):
    """Forward pass of BasicConv2d.

    x:             (N, C_in, H, W)   NCHW activations
    weight:        (C_out, C_in, KH, KW)   nn.Conv2d weight layout
    padding:       int, symmetric spatial zero padding (fused into the kernel)
    scale, bias:   optional per-out-channel affine (eval-mode folded norm /
                   conv bias), applied on the f32 accumulator in-kernel
    act:           apply ReLU
    compute_dtype: MXU operand dtype (e.g. jnp.bfloat16 on v5e/v6e/v7x);
                   accumulation and the affine epilogue stay float32.
    """
    assert stride == 1, "TODO(synk): only stride=1 (module default) implemented"
    n, c_in, h, w = x.shape
    c_out, c_in_w, kh, kw = weight.shape
    assert c_in == c_in_w
    h_pad, w_pad = h + 2 * padding, w + 2 * padding
    h_out, w_out = h_pad - kh + 1, w_pad - kw + 1
    assert h_out > 0 and w_out > 0

    cdt = jnp.dtype(compute_dtype) if compute_dtype is not None else jnp.dtype(x.dtype)
    out_dtype = x.dtype

    # Channel padding up to the sublane tile (8 for f32, 16 for bf16): the
    # padded rows exist only in the VMEM scratch + weight matrix (zeros), the
    # HBM activations stay at C_in.
    sub = max(1, 32 // cdt.itemsize)
    c_in_p = -(-c_in // sub) * sub

    # Free contiguous reshape (no HBM pass): flattened spatial on the lane axis.
    x_flat = x.reshape(n, c_in, h * w)

    # Weight -> (KH*KW, C_out, C_in_p), tap order matches tap_offsets below.
    w_k = jnp.transpose(weight, (2, 3, 0, 1)).reshape(kh * kw, c_out, c_in)
    if c_in_p != c_in:
        w_k = jnp.pad(w_k, ((0, 0), (0, 0), (0, c_in_p - c_in)))
    w_k = w_k.astype(cdt)

    # Flattened (wrap-around) output geometry.
    m = (h_out - 1) * w_pad + w_out              # last valid position + 1
    row_len = h_out * w_pad                      # valid rows incl. junk columns
    m_r = -(-row_len // 128) * 128               # lane-dense output length
    max_off = (kh - 1) * w_pad + (kw - 1)
    # Invariant of the stride-1 wrap-around flattening scheme (fail loudly).
    assert max_off + m == h_pad * w_pad
    l_store = max_off + m_r                      # staging scratch lane extent
    tap_offsets = tuple(i * w_pad + j for i in range(kh) for j in range(kw))

    # Batch blocking: as much work per grid step as the batch allows.
    b_blk = min(n, batch_block if batch_block is not None else 8)
    while n % b_blk:
        b_blk -= 1

    has_scale = scale is not None
    has_bias = bias is not None

    kernel = functools.partial(
        _conv_kernel, b_blk=b_blk, c_in=c_in, h=h, w=w, pad=padding,
        w_pad=w_pad, tap_offsets=tap_offsets, m_r=m_r,
        has_scale=has_scale, has_bias=has_bias, use_act=act)

    in_specs = [
        pl.BlockSpec((b_blk, c_in, h * w), lambda g: (g, 0, 0)),
        pl.BlockSpec((kh * kw, c_out, c_in_p), lambda g: (0, 0, 0)),
    ]
    args = [x_flat, w_k]
    if has_scale:
        in_specs.append(pl.BlockSpec((c_out, 1), lambda g: (0, 0)))
        args.append(jnp.asarray(scale, jnp.float32).reshape(c_out, 1))
    if has_bias:
        in_specs.append(pl.BlockSpec((c_out, 1), lambda g: (0, 0)))
        args.append(jnp.asarray(bias, jnp.float32).reshape(c_out, 1))

    # Rough VMEM budget (double-buffered blocks + scratch + live accumulator).
    x_item = jnp.dtype(x.dtype).itemsize
    vmem_est = (2 * b_blk * c_in * h * w * x_item
                + 2 * w_k.size * cdt.itemsize
                + 2 * b_blk * c_out * m_r * jnp.dtype(out_dtype).itemsize
                + c_in_p * l_store * cdt.itemsize
                + c_out * m_r * 4 + (1 << 20))
    vmem_limit = int(min(112 * (1 << 20), max(32 * (1 << 20), 2 * vmem_est)))

    flops = 2 * n * h_out * w_out * c_out * c_in * kh * kw
    bytes_accessed = (x_flat.size * x_item + w_k.size * cdt.itemsize
                      + n * c_out * m_r * jnp.dtype(out_dtype).itemsize)

    out_flat = pl.pallas_call(
        kernel,
        out_shape=jax.ShapeDtypeStruct((n, c_out, m_r), out_dtype),
        grid_spec=pltpu.PrefetchScalarGridSpec(
            num_scalar_prefetch=0,
            grid=(n // b_blk,),
            in_specs=in_specs,
            out_specs=pl.BlockSpec((b_blk, c_out, m_r), lambda g: (g, 0, 0)),
            scratch_shapes=[pltpu.VMEM((c_in_p, l_store), cdt)],
        ),
        compiler_params=pltpu.CompilerParams(
            dimension_semantics=("parallel",),
            vmem_limit_bytes=vmem_limit),
        cost_estimate=pl.CostEstimate(flops=flops, transcendentals=0,
                                      bytes_accessed=int(bytes_accessed)),
    )(*args)

    # Already NCHW order: drop the lane tail and the kw-1 wrap-around junk
    # columns.  TODO(synk): fuse this crop into the consumer in a full network.
    out = out_flat[:, :, :row_len].reshape(n, c_out, h_out, w_pad)
    return out[:, :, :, :w_out]


def _reference(x, weight, padding, scale, bias, act):
    out = jax.lax.conv_general_dilated(
        x, weight, window_strides=(1, 1),
        padding=[(padding, padding), (padding, padding)],
        dimension_numbers=('NCHW', 'OIHW', 'NCHW'))
    if scale is not None:
        out = out * scale[None, :, None, None]
    if bias is not None:
        out = out + bias[None, :, None, None]
    if act:
        out = jnp.maximum(out, 0.0)
    return out


if __name__ == "__main__":
    key = jax.random.PRNGKey(0)
    k_x, k_w, k_s, k_b = jax.random.split(key, 4)

    # BasicConv2d(in_channels=4, out_channels=8), defaults: kernel_size=3,
    # stride=1, padding=0, bias=False, no norm, no act.
    N, C_IN, H, W = 2, 4, 16, 16
    C_OUT, K = 8, 3

    x = jax.random.normal(k_x, (N, C_IN, H, W), jnp.float32)
    weight = jax.random.normal(k_w, (C_OUT, C_IN, K, K), jnp.float32) * 0.1

    # --- default config: just the conv ---
    out = jax.block_until_ready(basic_conv2d(x, weight, padding=0))
    ref = _reference(x, weight, 0, None, None, False)
    assert out.shape == (N, C_OUT, H - K + 1, W - K + 1)
    assert jnp.allclose(out, ref, atol=1e-4, rtol=1e-4), \
        float(jnp.abs(out - ref).max())

    # --- norm_layer + act_layer (eval-mode affine norm + ReLU), padding=1 ---
    scale = jax.random.normal(k_s, (C_OUT,), jnp.float32) * 0.5 + 1.0
    bias = jax.random.normal(k_b, (C_OUT,), jnp.float32) * 0.1
    out2 = jax.block_until_ready(
        basic_conv2d(x, weight, padding=1, scale=scale, bias=bias, act=True))
    ref2 = _reference(x, weight, 1, scale, bias, True)
    assert out2.shape == (N, C_OUT, H, W)
    assert jnp.allclose(out2, ref2, atol=1e-4, rtol=1e-4), \
        float(jnp.abs(out2 - ref2).max())

    # --- same config with bf16 MXU operands (f32 accumulation / epilogue) ---
    out3 = jax.block_until_ready(
        basic_conv2d(x, weight, padding=1, scale=scale, bias=bias, act=True,
                     compute_dtype=jnp.bfloat16))
    assert out3.shape == (N, C_OUT, H, W)
    assert jnp.allclose(out3, ref2, atol=1e-1, rtol=1e-1), \
        float(jnp.abs(out3 - ref2).max())

    print("KERNEL_OK")
</pallas_src>

<mosaic_0001>
module attributes {stable_mosaic.version = 11 : i64} {
  func.func @_conv_kernel(%arg0: i32, %arg1: memref<2x4x256xf32, #tpu.memory_space<vmem>>, %arg2: memref<9x8x8xf32, #tpu.memory_space<vmem>>, %arg3: memref<2x8x256xf32, #tpu.memory_space<vmem>>, %arg4: memref<8x290xf32, #tpu.memory_space<vmem>>) attributes {dimension_semantics = [#tpu.dimension_semantics<parallel>], iteration_bounds = array<i64: 1>, scalar_prefetch = 0 : i64, scratch_operands = 1 : i64, tpu.core_type = #tpu.core_type<tc>, window_params = [{transform_indices = @transform_0, window_bounds = array<i64: 2, 4, 256>}, {pipeline_mode = #tpu.pipeline_mode<synchronous>, transform_indices = @transform_1, window_bounds = array<i64: 9, 8, 8>}, {transform_indices = @transform_2, window_bounds = array<i64: 2, 8, 256>}]} {
    %cst = arith.constant 0.000000e+00 : f32
    %0 = vector.broadcast %cst : f32 to vector<8x290xf32>
    %c0 = arith.constant 0 : index
    %c0_0 = arith.constant 0 : index
    %1 = vector.load %arg4[%c0, %c0_0] : memref<8x290xf32, #tpu.memory_space<vmem>>, vector<8x290xf32>
    tpu.vector_store %arg4[%c0, %c0_0], %0 {strides = array<i32>} : memref<8x290xf32, #tpu.memory_space<vmem>>, vector<8x290xf32>,
    %c0_1 = arith.constant 0 : index
    %c0_2 = arith.constant 0 : index
    %c0_3 = arith.constant 0 : index
    %2 = vector.load %arg2[%c0_1, %c0_2, %c0_3] : memref<9x8x8xf32, #tpu.memory_space<vmem>>, vector<9x8x8xf32>
    %c0_4 = arith.constant 0 : index
    %c0_5 = arith.constant 0 : index
    %c0_6 = arith.constant 0 : index
    %3 = vector.load %arg1[%c0_4, %c0_5, %c0_6] : memref<2x4x256xf32, #tpu.memory_space<vmem>>, vector<1x4x256xf32>
    %4 = vector.shape_cast %3 : vector<1x4x256xf32> to vector<4x256xf32>
    %c0_7 = arith.constant 0 : index
    %c0_8 = arith.constant 0 : index
    %5 = vector.load %arg4[%c0_7, %c0_8] : memref<8x290xf32, #tpu.memory_space<vmem>>, vector<4x256xf32>
    tpu.vector_store %arg4[%c0_7, %c0_8], %4 {strides = array<i32>} : memref<8x290xf32, #tpu.memory_space<vmem>>, vector<4x256xf32>,
    %cst_9 = arith.constant 0.000000e+00 : f32
    %6 = vector.broadcast %cst_9 : f32 to vector<8x256xf32>
    %7 = vector.extract_strided_slice %2 {offsets = [0, 0, 0], sizes = [1, 8, 8], strides = [1, 1, 1]} : vector<9x8x8xf32> to vector<1x8x8xf32>
    %8 = vector.shape_cast %7 : vector<1x8x8xf32> to vector<8x8xf32>
    %c0_10 = arith.constant 0 : index
    %c0_11 = arith.constant 0 : index
    %9 = vector.load %arg4[%c0_10, %c0_11] : memref<8x290xf32, #tpu.memory_space<vmem>>, vector<8x256xf32>
    %cst_12 = arith.constant dense<0.000000e+00> : vector<8x256xf32>
    %10 = tpu.matmul %8, %9, %cst_12 {dimension_numbers = #tpu.dot_dimension_numbers<[1], [0], [0], [1], [0, 0, 1, 1], [], []>} : vector<8x8xf32>, vector<8x256xf32>, vector<8x256xf32> -> vector<8x256xf32>
    %11 = arith.addf %6, %10 : vector<8x256xf32>
    %12 = vector.extract_strided_slice %2 {offsets = [1, 0, 0], sizes = [1, 8, 8], strides = [1, 1, 1]} : vector<9x8x8xf32> to vector<1x8x8xf32>
    %13 = vector.shape_cast %12 : vector<1x8x8xf32> to vector<8x8xf32>
    %c0_13 = arith.constant 0 : index
    %c1 = arith.constant 1 : index
    %14 = vector.load %arg4[%c0_13, %c1] : memref<8x290xf32, #tpu.memory_space<vmem>>, vector<8x256xf32>
    %cst_14 = arith.constant dense<0.000000e+00> : vector<8x256xf32>
    %15 = tpu.matmul %13, %14, %cst_14 {dimension_numbers = #tpu.dot_dimension_numbers<[1], [0], [0], [1], [0, 0, 1, 1], [], []>} : vector<8x8xf32>, vector<8x256xf32>, vector<8x256xf32> -> vector<8x256xf32>
    %16 = arith.addf %11, %15 : vector<8x256xf32>
    %17 = vector.extract_strided_slice %2 {offsets = [2, 0, 0], sizes = [1, 8, 8], strides = [1, 1, 1]} : vector<9x8x8xf32> to vector<1x8x8xf32>
    %18 = vector.shape_cast %17 : vector<1x8x8xf32> to vector<8x8xf32>
    %c0_15 = arith.constant 0 : index
    %c2 = arith.constant 2 : index
    %19 = vector.load %arg4[%c0_15, %c2] : memref<8x290xf32, #tpu.memory_space<vmem>>, vector<8x256xf32>
    %cst_16 = arith.constant dense<0.000000e+00> : vector<8x256xf32>
    %20 = tpu.matmul %18, %19, %cst_16 {dimension_numbers = #tpu.dot_dimension_numbers<[1], [0], [0], [1], [0, 0, 1, 1], [], []>} : vector<8x8xf32>, vector<8x256xf32>, vector<8x256xf32> -> vector<8x256xf32>
    %21 = arith.addf %16, %20 : vector<8x256xf32>
    %22 = vector.extract_strided_slice %2 {offsets = [3, 0, 0], sizes = [1, 8, 8], strides = [1, 1, 1]} : vector<9x8x8xf32> to vector<1x8x8xf32>
    %23 = vector.shape_cast %22 : vector<1x8x8xf32> to vector<8x8xf32>
    %c0_17 = arith.constant 0 : index
    %c16 = arith.constant 16 : index
    %24 = vector.load %arg4[%c0_17, %c16] : memref<8x290xf32, #tpu.memory_space<vmem>>, vector<8x256xf32>
    %cst_18 = arith.constant dense<0.000000e+00> : vector<8x256xf32>
    %25 = tpu.matmul %23, %24, %cst_18 {dimension_numbers = #tpu.dot_dimension_numbers<[1], [0], [0], [1], [0, 0, 1, 1], [], []>} : vector<8x8xf32>, vector<8x256xf32>, vector<8x256xf32> -> vector<8x256xf32>
    %26 = arith.addf %21, %25 : vector<8x256xf32>
    %27 = vector.extract_strided_slice %2 {offsets = [4, 0, 0], sizes = [1, 8, 8], strides = [1, 1, 1]} : vector<9x8x8xf32> to vector<1x8x8xf32>
    %28 = vector.shape_cast %27 : vector<1x8x8xf32> to vector<8x8xf32>
    %c0_19 = arith.constant 0 : index
    %c17 = arith.constant 17 : index
    %29 = vector.load %arg4[%c0_19, %c17] : memref<8x290xf32, #tpu.memory_space<vmem>>, vector<8x256xf32>
    %cst_20 = arith.constant dense<0.000000e+00> : vector<8x256xf32>
    %30 = tpu.matmul %28, %29, %cst_20 {dimension_numbers = #tpu.dot_dimension_numbers<[1], [0], [0], [1], [0, 0, 1, 1], [], []>} : vector<8x8xf32>, vector<8x256xf32>, vector<8x256xf32> -> vector<8x256xf32>
    %31 = arith.addf %26, %30 : vector<8x256xf32>
    %32 = vector.extract_strided_slice %2 {offsets = [5, 0, 0], sizes = [1, 8, 8], strides = [1, 1, 1]} : vector<9x8x8xf32> to vector<1x8x8xf32>
    %33 = vector.shape_cast %32 : vector<1x8x8xf32> to vector<8x8xf32>
    %c0_21 = arith.constant 0 : index
    %c18 = arith.constant 18 : index
    %34 = vector.load %arg4[%c0_21, %c18] : memref<8x290xf32, #tpu.memory_space<vmem>>, vector<8x256xf32>
    %cst_22 = arith.constant dense<0.000000e+00> : vector<8x256xf32>
    %35 = tpu.matmul %33, %34, %cst_22 {dimension_numbers = #tpu.dot_dimension_numbers<[1], [0], [0], [1], [0, 0, 1, 1], [], []>} : vector<8x8xf32>, vector<8x256xf32>, vector<8x256xf32> -> vector<8x256xf32>
    %36 = arith.addf %31, %35 : vector<8x256xf32>
    %37 = vector.extract_strided_slice %2 {offsets = [6, 0, 0], sizes = [1, 8, 8], strides = [1, 1, 1]} : vector<9x8x8xf32> to vector<1x8x8xf32>
    %38 = vector.shape_cast %37 : vector<1x8x8xf32> to vector<8x8xf32>
    %c0_23 = arith.constant 0 : index
    %c32 = arith.constant 32 : index
    %39 = vector.load %arg4[%c0_23, %c32] : memref<8x290xf32, #tpu.memory_space<vmem>>, vector<8x256xf32>
    %cst_24 = arith.constant dense<0.000000e+00> : vector<8x256xf32>
    %40 = tpu.matmul %38, %39, %cst_24 {dimension_numbers = #tpu.dot_dimension_numbers<[1], [0], [0], [1], [0, 0, 1, 1], [], []>} : vector<8x8xf32>, vector<8x256xf32>, vector<8x256xf32> -> vector<8x256xf32>
    %41 = arith.addf %36, %40 : vector<8x256xf32>
    %42 = vector.extract_strided_slice %2 {offsets = [7, 0, 0], sizes = [1, 8, 8], strides = [1, 1, 1]} : vector<9x8x8xf32> to vector<1x8x8xf32>
    %43 = vector.shape_cast %42 : vector<1x8x8xf32> to vector<8x8xf32>
    %c0_25 = arith.constant 0 : index
    %c33 = arith.constant 33 : index
    %44 = vector.load %arg4[%c0_25, %c33] : memref<8x290xf32, #tpu.memory_space<vmem>>, vector<8x256xf32>
    %cst_26 = arith.constant dense<0.000000e+00> : vector<8x256xf32>
    %45 = tpu.matmul %43, %44, %cst_26 {dimension_numbers = #tpu.dot_dimension_numbers<[1], [0], [0], [1], [0, 0, 1, 1], [], []>} : vector<8x8xf32>, vector<8x256xf32>, vector<8x256xf32> -> vector<8x256xf32>
    %46 = arith.addf %41, %45 : vector<8x256xf32>
    %47 = vector.extract_strided_slice %2 {offsets = [8, 0, 0], sizes = [1, 8, 8], strides = [1, 1, 1]} : vector<9x8x8xf32> to vector<1x8x8xf32>
    %48 = vector.shape_cast %47 : vector<1x8x8xf32> to vector<8x8xf32>
    %c0_27 = arith.constant 0 : index
    %c34 = arith.constant 34 : index
    %49 = vector.load %arg4[%c0_27, %c34] : memref<8x290xf32, #tpu.memory_space<vmem>>, vector<8x256xf32>
    %cst_28 = arith.constant dense<0.000000e+00> : vector<8x256xf32>
    %50 = tpu.matmul %48, %49, %cst_28 {dimension_numbers = #tpu.dot_dimension_numbers<[1], [0], [0], [1], [0, 0, 1, 1], [], []>} : vector<8x8xf32>, vector<8x256xf32>, vector<8x256xf32> -> vector<8x256xf32>
    %51 = arith.addf %46, %50 : vector<8x256xf32>
    %c0_29 = arith.constant 0 : index
    %c0_30 = arith.constant 0 : index
    %c0_31 = arith.constant 0 : index
    %52 = vector.load %arg3[%c0_29, %c0_30, %c0_31] : memref<2x8x256xf32, #tpu.memory_space<vmem>>, vector<1x8x256xf32>
    %53 = vector.shape_cast %52 : vector<1x8x256xf32> to vector<8x256xf32>
    %54 = vector.shape_cast %51 : vector<8x256xf32> to vector<1x8x256xf32>
    tpu.vector_store %arg3[%c0_29, %c0_30, %c0_31], %54 {strides = array<i32>} : memref<2x8x256xf32, #tpu.memory_space<vmem>>, vector<1x8x256xf32>,
    %c1_32 = arith.constant 1 : index
    %c0_33 = arith.constant 0 : index
    %c0_34 = arith.constant 0 : index
    %55 = vector.load %arg1[%c1_32, %c0_33, %c0_34] : memref<2x4x256xf32, #tpu.memory_space<vmem>>, vector<1x4x256xf32>
    %56 = vector.shape_cast %55 : vector<1x4x256xf32> to vector<4x256xf32>
    %c0_35 = arith.constant 0 : index
    %c0_36 = arith.constant 0 : index
    %57 = vector.load %arg4[%c0_35, %c0_36] : memref<8x290xf32, #tpu.memory_space<vmem>>, vector<4x256xf32>
    tpu.vector_store %arg4[%c0_35, %c0_36], %56 {strides = array<i32>} : memref<8x290xf32, #tpu.memory_space<vmem>>, vector<4x256xf32>,
    %cst_37 = arith.constant 0.000000e+00 : f32
    %58 = vector.broadcast %cst_37 : f32 to vector<8x256xf32>
    %59 = vector.extract_strided_slice %2 {offsets = [0, 0, 0], sizes = [1, 8, 8], strides = [1, 1, 1]} : vector<9x8x8xf32> to vector<1x8x8xf32>
    %60 = vector.shape_cast %59 : vector<1x8x8xf32> to vector<8x8xf32>
    %c0_38 = arith.constant 0 : index
    %c0_39 = arith.constant 0 : index
    %61 = vector.load %arg4[%c0_38, %c0_39] : memref<8x290xf32, #tpu.memory_space<vmem>>, vector<8x256xf32>
    %cst_40 = arith.constant dense<0.000000e+00> : vector<8x256xf32>
    %62 = tpu.matmul %60, %61, %cst_40 {dimension_numbers = #tpu.dot_dimension_numbers<[1], [0], [0], [1], [0, 0, 1, 1], [], []>} : vector<8x8xf32>, vector<8x256xf32>, vector<8x256xf32> -> vector<8x256xf32>
    %63 = arith.addf %58, %62 : vector<8x256xf32>
    %64 = vector.extract_strided_slice %2 {offsets = [1, 0, 0], sizes = [1, 8, 8], strides = [1, 1, 1]} : vector<9x8x8xf32> to vector<1x8x8xf32>
    %65 = vector.shape_cast %64 : vector<1x8x8xf32> to vector<8x8xf32>
    %c0_41 = arith.constant 0 : index
    %c1_42 = arith.constant 1 : index
    %66 = vector.load %arg4[%c0_41, %c1_42] : memref<8x290xf32, #tpu.memory_space<vmem>>, vector<8x256xf32>
    %cst_43 = arith.constant dense<0.000000e+00> : vector<8x256xf32>
    %67 = tpu.matmul %65, %66, %cst_43 {dimension_numbers = #tpu.dot_dimension_numbers<[1], [0], [0], [1], [0, 0, 1, 1], [], []>} : vector<8x8xf32>, vector<8x256xf32>, vector<8x256xf32> -> vector<8x256xf32>
    %68 = arith.addf %63, %67 : vector<8x256xf32>
    %69 = vector.extract_strided_slice %2 {offsets = [2, 0, 0], sizes = [1, 8, 8], strides = [1, 1, 1]} : vector<9x8x8xf32> to vector<1x8x8xf32>
    %70 = vector.shape_cast %69 : vector<1x8x8xf32> to vector<8x8xf32>
    %c0_44 = arith.constant 0 : index
    %c2_45 = arith.constant 2 : index
    %71 = vector.load %arg4[%c0_44, %c2_45] : memref<8x290xf32, #tpu.memory_space<vmem>>, vector<8x256xf32>
    %cst_46 = arith.constant dense<0.000000e+00> : vector<8x256xf32>
    %72 = tpu.matmul %70, %71, %cst_46 {dimension_numbers = #tpu.dot_dimension_numbers<[1], [0], [0], [1], [0, 0, 1, 1], [], []>} : vector<8x8xf32>, vector<8x256xf32>, vector<8x256xf32> -> vector<8x256xf32>
    %73 = arith.addf %68, %72 : vector<8x256xf32>
    %74 = vector.extract_strided_slice %2 {offsets = [3, 0, 0], sizes = [1, 8, 8], strides = [1, 1, 1]} : vector<9x8x8xf32> to vector<1x8x8xf32>
    %75 = vector.shape_cast %74 : vector<1x8x8xf32> to vector<8x8xf32>
    %c0_47 = arith.constant 0 : index
    %c16_48 = arith.constant 16 : index
    %76 = vector.load %arg4[%c0_47, %c16_48] : memref<8x290xf32, #tpu.memory_space<vmem>>, vector<8x256xf32>
    %cst_49 = arith.constant dense<0.000000e+00> : vector<8x256xf32>
    %77 = tpu.matmul %75, %76, %cst_49 {dimension_numbers = #tpu.dot_dimension_numbers<[1], [0], [0], [1], [0, 0, 1, 1], [], []>} : vector<8x8xf32>, vector<8x256xf32>, vector<8x256xf32> -> vector<8x256xf32>
    %78 = arith.addf %73, %77 : vector<8x256xf32>
    %79 = vector.extract_strided_slice %2 {offsets = [4, 0, 0], sizes = [1, 8, 8], strides = [1, 1, 1]} : vector<9x8x8xf32> to vector<1x8x8xf32>
    %80 = vector.shape_cast %79 : vector<1x8x8xf32> to vector<8x8xf32>
    %c0_50 = arith.constant 0 : index
    %c17_51 = arith.constant 17 : index
    %81 = vector.load %arg4[%c0_50, %c17_51] : memref<8x290xf32, #tpu.memory_space<vmem>>, vector<8x256xf32>
    %cst_52 = arith.constant dense<0.000000e+00> : vector<8x256xf32>
    %82 = tpu.matmul %80, %81, %cst_52 {dimension_numbers = #tpu.dot_dimension_numbers<[1], [0], [0], [1], [0, 0, 1, 1], [], []>} : vector<8x8xf32>, vector<8x256xf32>, vector<8x256xf32> -> vector<8x256xf32>
    %83 = arith.addf %78, %82 : vector<8x256xf32>
    %84 = vector.extract_strided_slice %2 {offsets = [5, 0, 0], sizes = [1, 8, 8], strides = [1, 1, 1]} : vector<9x8x8xf32> to vector<1x8x8xf32>
    %85 = vector.shape_cast %84 : vector<1x8x8xf32> to vector<8x8xf32>
    %c0_53 = arith.constant 0 : index
    %c18_54 = arith.constant 18 : index
    %86 = vector.load %arg4[%c0_53, %c18_54] : memref<8x290xf32, #tpu.memory_space<vmem>>, vector<8x256xf32>
    %cst_55 = arith.constant dense<0.000000e+00> : vector<8x256xf32>
    %87 = tpu.matmul %85, %86, %cst_55 {dimension_numbers = #tpu.dot_dimension_numbers<[1], [0], [0], [1], [0, 0, 1, 1], [], []>} : vector<8x8xf32>, vector<8x256xf32>, vector<8x256xf32> -> vector<8x256xf32>
    %88 = arith.addf %83, %87 : vector<8x256xf32>
    %89 = vector.extract_strided_slice %2 {offsets = [6, 0, 0], sizes = [1, 8, 8], strides = [1, 1, 1]} : vector<9x8x8xf32> to vector<1x8x8xf32>
    %90 = vector.shape_cast %89 : vector<1x8x8xf32> to vector<8x8xf32>
    %c0_56 = arith.constant 0 : index
    %c32_57 = arith.constant 32 : index
    %91 = vector.load %arg4[%c0_56, %c32_57] : memref<8x290xf32, #tpu.memory_space<vmem>>, vector<8x256xf32>
    %cst_58 = arith.constant dense<0.000000e+00> : vector<8x256xf32>
    %92 = tpu.matmul %90, %91, %cst_58 {dimension_numbers = #tpu.dot_dimension_numbers<[1], [0], [0], [1], [0, 0, 1, 1], [], []>} : vector<8x8xf32>, vector<8x256xf32>, vector<8x256xf32> -> vector<8x256xf32>
    %93 = arith.addf %88, %92 : vector<8x256xf32>
    %94 = vector.extract_strided_slice %2 {offsets = [7, 0, 0], sizes = [1, 8, 8], strides = [1, 1, 1]} : vector<9x8x8xf32> to vector<1x8x8xf32>
    %95 = vector.shape_cast %94 : vector<1x8x8xf32> to vector<8x8xf32>
    %c0_59 = arith.constant 0 : index
    %c33_60 = arith.constant 33 : index
    %96 = vector.load %arg4[%c0_59, %c33_60] : memref<8x290xf32, #tpu.memory_space<vmem>>, vector<8x256xf32>
    %cst_61 = arith.constant dense<0.000000e+00> : vector<8x256xf32>
    %97 = tpu.matmul %95, %96, %cst_61 {dimension_numbers = #tpu.dot_dimension_numbers<[1], [0], [0], [1], [0, 0, 1, 1], [], []>} : vector<8x8xf32>, vector<8x256xf32>, vector<8x256xf32> -> vector<8x256xf32>
    %98 = arith.addf %93, %97 : vector<8x256xf32>
    %99 = vector.extract_strided_slice %2 {offsets = [8, 0, 0], sizes = [1, 8, 8], strides = [1, 1, 1]} : vector<9x8x8xf32> to vector<1x8x8xf32>
    %100 = vector.shape_cast %99 : vector<1x8x8xf32> to vector<8x8xf32>
    %c0_62 = arith.constant 0 : index
    %c34_63 = arith.constant 34 : index
    %101 = vector.load %arg4[%c0_62, %c34_63] : memref<8x290xf32, #tpu.memory_space<vmem>>, vector<8x256xf32>
    %cst_64 = arith.constant dense<0.000000e+00> : vector<8x256xf32>
    %102 = tpu.matmul %100, %101, %cst_64 {dimension_numbers = #tpu.dot_dimension_numbers<[1], [0], [0], [1], [0, 0, 1, 1], [], []>} : vector<8x8xf32>, vector<8x256xf32>, vector<8x256xf32> -> vector<8x256xf32>
    %103 = arith.addf %98, %102 : vector<8x256xf32>
    %c1_65 = arith.constant 1 : index
    %c0_66 = arith.constant 0 : index
    %c0_67 = arith.constant 0 : index
    %104 = vector.load %arg3[%c1_65, %c0_66, %c0_67] : memref<2x8x256xf32, #tpu.memory_space<vmem>>, vector<1x8x256xf32>
    %105 = vector.shape_cast %104 : vector<1x8x256xf32> to vector<8x256xf32>
    %106 = vector.shape_cast %103 : vector<8x256xf32> to vector<1x8x256xf32>
    tpu.vector_store %arg3[%c1_65, %c0_66, %c0_67], %106 {strides = array<i32>} : memref<2x8x256xf32, #tpu.memory_space<vmem>>, vector<1x8x256xf32>,
    return
  }
  func.func @transform_0(%arg0: i32) -> (i32, i32, i32) {
    %c0_i32 = arith.constant 0 : i32
    %c0_i32_0 = arith.constant 0 : i32
    %c0_i32_1 = arith.constant 0 : i32
    return %arg0, %c0_i32, %c0_i32_0 : i32, i32, i32
  }
  func.func @transform_1(%arg0: i32) -> (i32, i32, i32) {
    %c0_i32 = arith.constant 0 : i32
    %c0_i32_0 = arith.constant 0 : i32
    %c0_i32_1 = arith.constant 0 : i32
    %c0_i32_2 = arith.constant 0 : i32
    return %c0_i32, %c0_i32_0, %c0_i32_1 : i32, i32, i32
  }
  func.func @transform_2(%arg0: i32) -> (i32, i32, i32) {
    %c0_i32 = arith.constant 0 : i32
    %c0_i32_0 = arith.constant 0 : i32
    %c0_i32_1 = arith.constant 0 : i32
    return %arg0, %c0_i32, %c0_i32_0 : i32, i32, i32
  }
}

</mosaic_0001>

<bundles_post_ra>
// kernel: tpu_custom_call.1
= control target key start
LH: loop header
LB: loop body
LE: loop exit
PB: predicated region body
PF: predicated region fallthrough
CT: control target
= control target key end

     0   :  { %vm14_vm0 = vcmask 277504   ;;  %v1662_v1 = vmov 0.0   ;;  %s1849_s0 = inlined_call_operand.vmem [shape: f32[2,4,256], index: 0, kind: input, shape index: {}]   ;;  %s1850_s1 = inlined_call_operand.vmem [shape: f32[9,8,8], index: 1, kind: input, shape index: {}]   ;;  %s1851_s2 = inlined_call_operand.hbm [shape: f32[2,8,256], index: 2, kind: output, shape index: {}]  }
   0x1   :  { %v25_v0 = vld [vmem:[%s1849_s0] sm:$0xff]  ;;  %15 = vst.msk [vmem:[#allocation2 + $0x10] sm:$0xff] %vm14_vm0, %v1662_v1  ;;  %12 = vst [vmem:[#allocation2] sm:$0xff] %v1662_v1  ;;  %116 = vmatprep.mubr.f32.mxu0 %v1662_v1  ;;  %895 = vmatprep.mubr.f32.mxu1 %v1662_v1 }
   0x2   :  { %13 = vst [vmem:[#allocation2 + $0x8] sm:$0xff] %v1662_v1  ;;  %v27_v2 = vcombine.high %v25_v0, %v25_v0 }
   0x3   :  { %7 = vsyncpa [#allocation4], 0  ;;  %29 = vst [vmem:[#allocation2] sm:$0xf] %v25_v0  ;;  %v1582_v3 = vld [vmem:[%s1849_s0 + $0x8] sm:$0xff]  ;;  %s1663_s13 = smov 127  }
   0x4   :  { %30 = vst [vmem:[#allocation2 + $0x8] sm:$0xf] %v27_v2  ;;  %v811_v4 = vcombine.high %v1582_v3, %v1582_v3  ;;  %s1664_s14 = smov 126   ;;  %s1665_s0 = smov 112   ;;  %vm43_vm1 = vcmask 1039360   ;;  %v17_v18 = vld [vmem:[%s1850_s1 + $0x8] sm:$0xff] }
   0x5   :  { %s1666_s15 = smov 111   ;;  %s1667_s16 = smov 110   ;;  %vm48_vm2 = vcmask 64512   ;;  %vm203_vm3 = vcmask 1031168   ;;  %v16_v26 = vld [vmem:[%s1850_s1] sm:$0xff]  ;;  %vm290_vm4 = vcmask 916480  }
   0x6   :  { %s1668_s17 = smov 96   ;;  %s1669_s18 = smov 95   ;;  %v18_v34 = vld [vmem:[%s1850_s1 + $0x10] sm:$0xff]  ;;  %vm377_vm5 = vcmask 908288   ;;  %v19_v42 = vld [vmem:[%s1850_s1 + $0x18] sm:$0xff]  ;;  %v20_v52 = vld [vmem:[%s1850_s1 + $0x20] sm:$0xff] }
   0x7   :  { %s1670_s19 = smov 94   ;;  %vm464_vm6 = vcmask 900096   ;;  %v21_v63 = vld [vmem:[%s1850_s1 + $0x28] sm:$0xff]  ;;  %vm551_vm7 = vcmask 785408   ;;  %vm638_vm8 = vcmask 777216   ;;  %vm725_vm9 = vcmask 769024  }
   0x8   :  { %v817_v5 = vld [vmem:[#allocation2 + $0x10] sm:$0xff]  ;;  %s1671_s10 = smov [#allocation3]  }
   0x9   :  { %825 = vrot.lane.b32.xlu1 %v817_v5, %s1663_s13  ;;  %41 = vrot.lane.b32.xlu0 %v817_v5, %s1663_s13  ;;  %s1562_s11 = sshll.u32 %s1671_s10, 4  ;;  %s1563_s11 = int_to_ptr.vmem [resolvable:$true] %s1562_s11 }
   0xa   :  { %v1700_v6 = vld [vmem:[#allocation2] sm:$0xff]  ;;  %p1643_p1 = scmp.lt.s32.totalorder %s1563_s11, %s1563_s11 }
   0xb   :  { %813 = vst [vmem:[#allocation2] sm:$0xf] %v1582_v3  ;;  %v1702_v7 = vld [vmem:[#allocation2 + $0x8] sm:$0xff] }
   0xc   :  { %814 = vst [vmem:[#allocation2 + $0x8] sm:$0xf] %v811_v4 }
   0xd   :  { %201 = vrot.lane.b32.xlu1 %v817_v5, %s1664_s14  ;;  %37 = vrot.lane.b32.xlu0 %v1700_v6, %s1663_s13 }
  0x11   :  { %977 = vrot.lane.b32.xlu1 %v817_v5, %s1664_s14  ;;  %39 = vrot.lane.b32.xlu0 %v1702_v7, %s1663_s13 }
  0x12   :  { %v1706_v8 = vld [vmem:[#allocation2] sm:$0xff] }
  0x13   :  { %v1710_v9 = vld [vmem:[#allocation2 + $0x8] sm:$0xff] }
  0x15   :  { %199 = vrot.lane.b32.xlu0 %v1702_v7, %s1664_s14  ;;  %821 = vrot.lane.b32.xlu1 %v1706_v8, %s1663_s13 }
  0x19   :  { %975 = vrot.lane.b32.xlu0 %v1710_v9, %s1664_s14  ;;  %823 = vrot.lane.b32.xlu1 %v1710_v9, %s1663_s13 }
  0x1d   :  { %197 = vrot.lane.b32.xlu0 %v1700_v6, %s1664_s14  ;;  %973 = vrot.lane.b32.xlu1 %v1706_v8, %s1664_s14 }
  0x21   :  { %286 = vrot.lane.b32.xlu0 %v1702_v7, %s1665_s0  ;;  %288 = vrot.lane.b32.xlu1 %v817_v5, %s1665_s0 }
  0x25   :  { %1058 = vrot.lane.b32.xlu0 %v1710_v9, %s1665_s0  ;;  %1060 = vrot.lane.b32.xlu1 %v817_v5, %s1665_s0 }
  0x29   :  { %284 = vrot.lane.b32.xlu0 %v1700_v6, %s1665_s0  ;;  %1056 = vrot.lane.b32.xlu1 %v1706_v8, %s1665_s0 }
  0x2d   :  { %373 = vrot.lane.b32.xlu0 %v1702_v7, %s1666_s15  ;;  %375 = vrot.lane.b32.xlu1 %v817_v5, %s1666_s15 }
  0x31   :  { %1141 = vrot.lane.b32.xlu0 %v1710_v9, %s1666_s15  ;;  %1143 = vrot.lane.b32.xlu1 %v817_v5, %s1666_s15 }
  0x35   :  { %371 = vrot.lane.b32.xlu0 %v1700_v6, %s1666_s15  ;;  %1139 = vrot.lane.b32.xlu1 %v1706_v8, %s1666_s15 }
  0x39   :  { %460 = vrot.lane.b32.xlu0 %v1702_v7, %s1667_s16  ;;  %462 = vrot.lane.b32.xlu1 %v817_v5, %s1667_s16 }
  0x3d   :  { %1224 = vrot.lane.b32.xlu0 %v1710_v9, %s1667_s16  ;;  %1226 = vrot.lane.b32.xlu1 %v817_v5, %s1667_s16 }
  0x41   :  { %458 = vrot.lane.b32.xlu0 %v1700_v6, %s1667_s16  ;;  %1222 = vrot.lane.b32.xlu1 %v1706_v8, %s1667_s16 }
  0x45   :  { %547 = vrot.lane.b32.xlu0 %v1702_v7, %s1668_s17  ;;  %549 = vrot.lane.b32.xlu1 %v817_v5, %s1668_s17 }
  0x49   :  { %1307 = vrot.lane.b32.xlu0 %v1710_v9, %s1668_s17  ;;  %1309 = vrot.lane.b32.xlu1 %v817_v5, %s1668_s17 }
  0x4d   :  { %545 = vrot.lane.b32.xlu0 %v1700_v6, %s1668_s17  ;;  %1305 = vrot.lane.b32.xlu1 %v1706_v8, %s1668_s17 }
  0x51   :  { %634 = vrot.lane.b32.xlu0 %v1702_v7, %s1669_s18  ;;  %636 = vrot.lane.b32.xlu1 %v817_v5, %s1669_s18 }
  0x55   :  { %1390 = vrot.lane.b32.xlu0 %v1710_v9, %s1669_s18  ;;  %1392 = vrot.lane.b32.xlu1 %v817_v5, %s1669_s18 }
  0x59   :  { %632 = vrot.lane.b32.xlu0 %v1700_v6, %s1669_s18  ;;  %1388 = vrot.lane.b32.xlu1 %v1706_v8, %s1669_s18 }
  0x5d   :  { %721 = vrot.lane.b32.xlu0 %v1702_v7, %s1670_s19  ;;  %723 = vrot.lane.b32.xlu1 %v817_v5, %s1670_s19 }
  0x61   :  { %1473 = vrot.lane.b32.xlu0 %v1710_v9, %s1670_s19  ;;  %1475 = vrot.lane.b32.xlu1 %v817_v5, %s1670_s19 }
  0x65   :  { %719 = vrot.lane.b32.xlu0 %v1700_v6, %s1670_s19  ;;  %1471 = vrot.lane.b32.xlu1 %v1706_v8, %s1670_s19 }
  0x7b   :  { %v826_v10 = vpop.permute.xlu1 %825  ;;  %v42_v11 = vpop.permute.xlu0 %41 }
  0x7f   :  { %v202_v12 = vpop.permute.xlu1 %201  ;;  %v38_v13 = vpop.permute.xlu0 %37 }
  0x83   :  { %v978_v14 = vpop.permute.xlu1 %977  ;;  %v40_v15 = vpop.permute.xlu0 %39 }
  0x84   :  { %v45_v16 = vsel %vm43_vm1, %v40_v15, %v42_v11  ;;  %v44_v17 = vsel %vm43_vm1, %v38_v13, %v40_v15  ;;  %v22_v11 = vld [vmem:[%s1850_s1 + $0x30] sm:$0xff] }
  0x85   :  { %52 = vmatprep.subr.mxu0 %v45_v16 }
  0x86   :  { %53 = vmatpush1.msra.mxu0 %v44_v17 }
  0x87   :  { %126 = vmatprep.subr.mxu0 %v1702_v7  ;;  %v200_v19 = vpop.permute.xlu0 %199  ;;  %v822_v20 = vpop.permute.xlu1 %821  ;;  %1573 = vmatmul.mubr.msk.f32.vlgmr.msra.gmra.mrb[0].mxu0 %vm48_vm2, %v17_v18 }
  0x88   :  { %127 = vmatpush1.msra.mxu0 %v1700_v6  ;;  %v205_v21 = vsel %vm203_vm3, %v200_v19, %v202_v12  ;;  %190 = vmatprep.mubr.f32.mxu0 %v1662_v1 }
  0x89   :  { %211 = vmatprep.subr.mxu0 %v205_v21 }
  0x8b   :  { %v976_v22 = vpop.permute.xlu0 %975  ;;  %v824_v23 = vpop.permute.xlu1 %823 }
  0x8c   :  { %v828_v24 = vsel %vm43_vm1, %v824_v23, %v826_v10  ;;  %v827_v25 = vsel %vm43_vm1, %v822_v20, %v824_v23  ;;  %v980_v30 = vsel %vm203_vm3, %v976_v22, %v978_v14 }
  0x8d   :  { %831 = vmatprep.subr.mxu1 %v828_v24 }
  0x8e   :  { %832 = vmatpush1.msra.mxu1 %v827_v25 }
  0x8f   :  { %v198_v27 = vpop.permute.xlu0 %197  ;;  %1583 = vmatmul.mubr.msk.f32.vlgmr.msra.gmra.mrb[0].mxu1 %vm48_vm2, %v17_v18  ;;  %902 = vmatprep.subr.mxu1 %v1710_v9  ;;  %v974_v28 = vpop.permute.xlu1 %973 }
  0x90   :  { %v204_v29 = vsel %vm203_vm3, %v198_v27, %v200_v19  ;;  %903 = vmatpush1.msra.mxu1 %v1706_v8  ;;  %1574 = vmatmul.mubr.msk.f32.vlgmr.msra.gmra.mrb[0].mxu0 %vm48_vm2, %v16_v26  ;;  %v979_v35 = vsel %vm203_vm3, %v974_v28, %v976_v22  ;;  %v23_v22 = vld [vmem:[%s1850_s1 + $0x38] sm:$0xff] }
  0x91   :  { %212 = vmatpush1.msra.mxu0 %v204_v29  ;;  %983 = vmatprep.subr.mxu1 %v980_v30 }
  0x92   :  { %966 = vmatprep.mubr.f32.mxu1 %v1662_v1  ;;  %275 = vmatprep.mubr.f32.mxu0 %v1662_v1 }
  0x93   :  { %v287_v31 = vpop.permute.xlu0 %286  ;;  %v289_v32 = vpop.permute.xlu1 %288 }
  0x94   :  { %v292_v33 = vsel %vm290_vm4, %v287_v31, %v289_v32 }
  0x95   :  { %298 = vmatprep.subr.mxu0 %v292_v33  ;;  %v24_v33 = vld [vmem:[%s1850_s1 + $0x40] sm:$0xff]  ;;  %s1638_s1 = scalar_lea.vmem %s1563_s11, 512 }
  0x96   :  { %p1639_p0 = scmp.ne.s32.totalorder %s1563_s11, %s1638_s1  ;;  %p1644_p2 = scmp.lt.s32.totalorder %s1638_s1, %s1638_s1 }
  0x97   :  { %v1059_v36 = vpop.permute.xlu0 %1058  ;;  %1584 = vmatmul.mubr.msk.f32.vlgmr.msra.gmra.mrb[0].mxu1 %vm48_vm2, %v16_v26  ;;  %v1061_v37 = vpop.permute.xlu1 %1060 }
  0x98   :  { %984 = vmatpush1.msra.mxu1 %v979_v35  ;;  %v1063_v38 = vsel %vm290_vm4, %v1059_v36, %v1061_v37  ;;  %1575 = vmatmul.mubr.msk.f32.vlgmr.msra.gmra.mrb[0].mxu0 %vm48_vm2, %v18_v34  ;;  %p1645_p3 = por %p1644_p2, %p1643_p1 }
  0x99   :  { %1066 = vmatprep.subr.mxu1 %v1063_v38  ;;  %1047 = vmatprep.mubr.f32.mxu1 %v1662_v1 }
  0x9a   :  { %362 = vmatprep.mubr.f32.mxu0 %v1662_v1  ;;  %p1646_p4 = pnand %p1645_p3, %p1639_p0 }
  0x9b   :  { %v285_v39 = vpop.permute.xlu0 %284  ;;  %v1057_v40 = vpop.permute.xlu1 %1056 }
  0x9c   :  { %v291_v41 = vsel %vm290_vm4, %v285_v39, %v287_v31  ;;  %v1062_v43 = vsel %vm290_vm4, %v1057_v40, %v1059_v36 }
  0x9d   :  { %299 = vmatpush1.msra.mxu0 %v291_v41 }
  0x9f   :  { %v374_v44 = vpop.permute.xlu0 %373  ;;  %1585 = vmatmul.mubr.msk.f32.vlgmr.msra.gmra.mrb[0].mxu1 %vm48_vm2, %v18_v34  ;;  %v376_v45 = vpop.permute.xlu1 %375 }
  0xa0   :  { %1067 = vmatpush1.msra.mxu1 %v1062_v43  ;;  %v379_v46 = vsel %vm377_vm5, %v374_v44, %v376_v45  ;;  %1130 = vmatprep.mubr.f32.mxu1 %v1662_v1 }
  0xa1   :  { %385 = vmatprep.subr.mxu0 %v379_v46  ;;  %1576 = vmatmul.mubr.msk.f32.vlgmr.msra.gmra.mrb[0].mxu0 %vm48_vm2, %v19_v42 }
  0xa2   :  { %449 = vmatprep.mubr.f32.mxu0 %v1662_v1 }
  0xa3   :  { %v1142_v47 = vpop.permute.xlu0 %1141  ;;  %v1144_v48 = vpop.permute.xlu1 %1143 }
  0xa4   :  { %v1146_v49 = vsel %vm377_vm5, %v1142_v47, %v1144_v48 }
  0xa5   :  { %1149 = vmatprep.subr.mxu1 %v1146_v49 }
  0xa7   :  { %v372_v50 = vpop.permute.xlu0 %371  ;;  %v1140_v51 = vpop.permute.xlu1 %1139  ;;  %1586 = vmatmul.mubr.msk.f32.vlgmr.msra.gmra.mrb[0].mxu1 %vm48_vm2, %v19_v42 }
  0xa8   :  { %v378_v53 = vsel %vm377_vm5, %v372_v50, %v374_v44  ;;  %v1145_v54 = vsel %vm377_vm5, %v1140_v51, %v1142_v47  ;;  %1213 = vmatprep.mubr.f32.mxu1 %v1662_v1 }
  0xa9   :  { %386 = vmatpush1.msra.mxu0 %v378_v53  ;;  %1150 = vmatpush1.msra.mxu1 %v1145_v54 }
  0xaa   :  { %1577 = vmatmul.mubr.msk.f32.vlgmr.msra.gmra.mrb[0].mxu0 %vm48_vm2, %v20_v52 }
  0xab   :  { %v461_v55 = vpop.permute.xlu0 %460  ;;  %v463_v56 = vpop.permute.xlu1 %462  ;;  %536 = vmatprep.mubr.f32.mxu0 %v1662_v1 }
  0xac   :  { %v466_v57 = vsel %vm464_vm6, %v461_v55, %v463_v56 }
  0xad   :  { %472 = vmatprep.subr.mxu0 %v466_v57 }
  0xaf   :  { %v1225_v58 = vpop.permute.xlu0 %1224  ;;  %v1227_v59 = vpop.permute.xlu1 %1226  ;;  %1587 = vmatmul.mubr.msk.f32.vlgmr.msra.gmra.mrb[0].mxu1 %vm48_vm2, %v20_v52 }
  0xb0   :  { %v1229_v60 = vsel %vm464_vm6, %v1225_v58, %v1227_v59  ;;  %1296 = vmatprep.mubr.f32.mxu1 %v1662_v1 }
  0xb1   :  { %1232 = vmatprep.subr.mxu1 %v1229_v60 }
  0xb3   :  { %v459_v61 = vpop.permute.xlu0 %458  ;;  %v1223_v62 = vpop.permute.xlu1 %1222 }
  0xb4   :  { %v465_v0 = vsel %vm464_vm6, %v459_v61, %v461_v55  ;;  %v1228_v2 = vsel %vm464_vm6, %v1223_v62, %v1225_v58 }
  0xb5   :  { %473 = vmatpush1.msra.mxu0 %v465_v0  ;;  %1233 = vmatpush1.msra.mxu1 %v1228_v2 }
  0xb6   :  { %1578 = vmatmul.mubr.msk.f32.vlgmr.msra.gmra.mrb[0].mxu0 %vm48_vm2, %v21_v63 }
  0xb7   :  { %v548_v3 = vpop.permute.xlu0 %547  ;;  %v550_v4 = vpop.permute.xlu1 %549  ;;  %1588 = vmatmul.mubr.msk.f32.vlgmr.msra.gmra.mrb[0].mxu1 %vm48_vm2, %v21_v63  ;;  %623 = vmatprep.mubr.f32.mxu0 %v1662_v1 }
  0xb8   :  { %v553_v5 = vsel %vm551_vm7, %v548_v3, %v550_v4  ;;  %1379 = vmatprep.mubr.f32.mxu1 %v1662_v1 }
  0xb9   :  { %559 = vmatprep.subr.mxu0 %v553_v5 }
  0xbb   :  { %v1308_v6 = vpop.permute.xlu0 %1307  ;;  %v1310_v7 = vpop.permute.xlu1 %1309 }
  0xbc   :  { %v1312_v8 = vsel %vm551_vm7, %v1308_v6, %v1310_v7 }
  0xbd   :  { %1315 = vmatprep.subr.mxu1 %v1312_v8 }
  0xbf   :  { %v546_v9 = vpop.permute.xlu0 %545  ;;  %v1306_v10 = vpop.permute.xlu1 %1305 }
  0xc0   :  { %v552_v12 = vsel %vm551_vm7, %v546_v9, %v548_v3  ;;  %v1311_v13 = vsel %vm551_vm7, %v1306_v10, %v1308_v6 }
  0xc1   :  { %560 = vmatpush1.msra.mxu0 %v552_v12  ;;  %1316 = vmatpush1.msra.mxu1 %v1311_v13 }
  0xc2   :  { %1579 = vmatmul.mubr.msk.f32.vlgmr.msra.gmra.mrb[0].mxu0 %vm48_vm2, %v22_v11  ;;  %1589 = vmatmul.mubr.msk.f32.vlgmr.msra.gmra.mrb[0].mxu1 %vm48_vm2, %v22_v11 }
  0xc3   :  { %v635_v14 = vpop.permute.xlu0 %634  ;;  %v637_v15 = vpop.permute.xlu1 %636  ;;  %710 = vmatprep.mubr.f32.mxu0 %v1662_v1  ;;  %1462 = vmatprep.mubr.f32.mxu1 %v1662_v1 }
  0xc4   :  { %v640_v16 = vsel %vm638_vm8, %v635_v14, %v637_v15 }
  0xc5   :  { %646 = vmatprep.subr.mxu0 %v640_v16 }
  0xc7   :  { %v1391_v17 = vpop.permute.xlu0 %1390  ;;  %v1393_v18 = vpop.permute.xlu1 %1392 }
  0xc8   :  { %v1395_v19 = vsel %vm638_vm8, %v1391_v17, %v1393_v18 }
  0xc9   :  { %1398 = vmatprep.subr.mxu1 %v1395_v19 }
  0xcb   :  { %v633_v20 = vpop.permute.xlu0 %632  ;;  %v1389_v21 = vpop.permute.xlu1 %1388 }
  0xcc   :  { %v639_v23 = vsel %vm638_vm8, %v633_v20, %v635_v14  ;;  %v1394_v24 = vsel %vm638_vm8, %v1389_v21, %v1391_v17 }
  0xcd   :  { %647 = vmatpush1.msra.mxu0 %v639_v23  ;;  %1399 = vmatpush1.msra.mxu1 %v1394_v24 }
  0xce   :  { %1580 = vmatmul.mubr.msk.f32.vlgmr.msra.gmra.mrb[0].mxu0 %vm48_vm2, %v23_v22  ;;  %1590 = vmatmul.mubr.msk.f32.vlgmr.msra.gmra.mrb[0].mxu1 %vm48_vm2, %v23_v22 }
  0xcf   :  { %v722_v25 = vpop.permute.xlu0 %721  ;;  %v724_v26 = vpop.permute.xlu1 %723  ;;  %797 = vmatprep.mubr.f32.mxu0 %v1662_v1  ;;  %1545 = vmatprep.mubr.f32.mxu1 %v1662_v1 }
  0xd0   :  { %v727_v27 = vsel %vm725_vm9, %v722_v25, %v724_v26 }
  0xd1   :  { %733 = vmatprep.subr.mxu0 %v727_v27 }
  0xd3   :  { %v1474_v28 = vpop.permute.xlu0 %1473  ;;  %v1476_v29 = vpop.permute.xlu1 %1475 }
  0xd4   :  { %v1478_v30 = vsel %vm725_vm9, %v1474_v28, %v1476_v29 }
  0xd5   :  { %1481 = vmatprep.subr.mxu1 %v1478_v30 }
  0xd7   :  { %v720_v31 = vpop.permute.xlu0 %719  ;;  %v1472_v32 = vpop.permute.xlu1 %1471 }
  0xd8   :  { %v726_v34 = vsel %vm725_vm9, %v720_v31, %v722_v25  ;;  %v1477_v35 = vsel %vm725_vm9, %v1472_v32, %v1474_v28 }
  0xd9   :  { %734 = vmatpush1.msra.mxu0 %v726_v34  ;;  %1482 = vmatpush1.msra.mxu1 %v1477_v35 }
  0xda   :  { %1581 = vmatmul.mubr.msk.f32.vlgmr.msra.gmra.mrb[0].mxu0 %vm48_vm2, %v24_v33  ;;  %1591 = vmatmul.mubr.msk.f32.vlgmr.msra.gmra.mrb[0].mxu1 %vm48_vm2, %v24_v33 }
 0x1ad   :  { %v799_v1 = vpop.f32.mrb[0].mxu0  ;;  %v1547_v36 = vpop.f32.mrb[0].mxu1 }
 0x1ae   :  { %806 = vst [vmem:[#allocation3] sm:$0xff] %v799_v1  ;;  %1555 = vst [vmem:[#allocation3 + $0x10] sm:$0xff] %v1547_v36  ;;  %v801_v37 = vpop.f32.mrb[1].mxu0  ;;  %v1549_v38 = vpop.f32.mrb[1].mxu1 }
 0x1af   :  { %807 = vst [vmem:[#allocation3 + $0x8] sm:$0xff] %v801_v37  ;;  %1556 = vst [vmem:[#allocation3 + $0x18] sm:$0xff] %v1549_v38 }
 0x1b0   :  { %1649 = shalt.err (!%p1646_p4)
}
 0x1b1   :  { %s1650_s14 = scalar_lea.hbm %s1851_s2, 512 }
 0x1b2   :  { %p1651_p5 = scmp.ne.s32.totalorder %s1851_s2, %s1650_s14  ;;  %p1654_p6 = scmp.lt.u32.totalorder %s1650_s14, %s1851_s2 }
 0x1b4   :  { %p1656_p7 = pnand %p1654_p6, %p1651_p5 }
 0x1b6   :  { %1659 = shalt.err (!%p1656_p7)
}
 0x1b7   :  { %s1672_s18 = smov 256   ;;  %s1673_s19 = smov 16  }
 0x1b8   :  { %1568 = dma.vmem_to_hbm [thread:$0]  %s1563_s11, 512, %s1851_s2, [#allocation4], %s1672_s18, %s1672_s18, %s1673_s19  }
 0x1b9   :  { %1660 = dma.done.wait [#allocation4], 512  }
 0x1ba   :  { %1661 = vsyncadd [#allocation4], 4294966784 }
 0x1bb   :  { %1572 = vsyncpa [#allocation4], 1 }

</bundles_post_ra>
